<compile_context>
chip_gen: v5e
topology: v5e:2x2
jax: 0.10.0
libtpu: 0.0.40
codegen_flags: <defaults>
</compile_context>

<pallas_src>
import functools

import jax
import jax.numpy as jnp
from jax import lax
from jax.experimental import pallas as pl
from jax.experimental.pallas import tpu as pltpu


# ----------------------------------------------------------------------------
# Pallas kernel: one batch element per grid step, lane-dense (H, W*C) layout.
# ----------------------------------------------------------------------------
def _i2r_identity_kernel(x_ref,      # (1, H, W*C)  input slab (bf16)
                         dw_ref,     # (2, 9, W*C)  dw taps (BN scale + W-edge folded)
                         wbig_ref,   # (W*C, W*C)   kron(I_W, fused 1x1) in bf16
                         bias_ref,   # (3, W*C)     [b1 | b_fused | b4] lane-tiled (f32)
                         o_ref,      # (1, H, W*C)  output slab (f32)
                         *, C):
    _, H, WC = x_ref.shape
    x = x_ref[0].astype(jnp.float32)      # upcast once; compute in f32 (v5e-safe)
    dw = dw_ref[...]                      # (2, 9, WC)
    bias = bias_ref[...]                  # (3, WC)

    def dwconv3x3(z, w9):
        # Horizontal (w) neighbours via lane rolls. The circular wrap-around
        # contributions are annihilated by the zeroed edge taps that were folded
        # into w9 host-side, so no lane-edge selects are needed here.
        zl = pltpu.roll(z, shift=C, axis=1)          # z[:, w-1, c]
        zr = pltpu.roll(z, shift=WC - C, axis=1)     # z[:, w+1, c] (non-negative shift)
        top = zl * w9[0:1] + z * w9[1:2] + zr * w9[2:3]   # ky = 0 (needs row h-1)
        mid = zl * w9[3:4] + z * w9[4:5] + zr * w9[5:6]   # ky = 1
        bot = zl * w9[6:7] + z * w9[7:8] + zr * w9[8:9]   # ky = 2 (needs row h+1)
        # Vertical (h) neighbours via sublane rolls; the cheap row masks are
        # recomputed locally so no mask state stays live across the MXU matmul.
        row = lax.broadcasted_iota(jnp.int32, (H, WC), 0)
        up = jnp.where(row >= 1, pltpu.roll(top, shift=1, axis=0), 0.0)
        dn = jnp.where(row < H - 1, pltpu.roll(bot, shift=H - 1, axis=0), 0.0)
        return up + mid + dn

    # --- dwise_conv1 (+ folded BN1) + ReLU ---
    y = jnp.maximum(dwconv3x3(x, dw[0]) + bias[0:1], 0.0)

    # --- project ∘ BN2 ∘ expand ∘ BN3 fused into one lane-dense MXU matmul ---
    u = jnp.dot(y.astype(jnp.bfloat16), wbig_ref[...],
                preferred_element_type=jnp.float32)
    u = jnp.maximum(u + bias[1:2], 0.0)

    # --- dwise_conv2 (+ folded BN4) + identity residual ---
    o_ref[0] = dwconv3x3(u, dw[1]) + bias[2:3] + x


# ----------------------------------------------------------------------------
# Wrapper: NCHW in / NCHW out, parameter folding/fusion, pallas_call setup.
# ----------------------------------------------------------------------------
def i2r_block_forward(x_nchw, params):
    (w_dw1, s1, b1, w_proj, s2, b2, w_exp, s3, b3, w_dw2, s4, b4) = params

    # TODO(synk): at model level keep activations resident in the lane-dense
    # (N, H, W*C) layout across blocks so these two layout ops (a full HBM
    # round-trip each) disappear; kept here only to match the NCHW interface.
    x = jnp.transpose(x_nchw, (0, 2, 3, 1)).astype(jnp.float32)   # NHWC
    N, H, W, C = x.shape
    WC = W * C
    x2 = x.reshape(N, H, WC).astype(jnp.bfloat16)   # bf16 slabs: half the DMA bytes

    # Depthwise taps: fold BN1/BN4 scales in, tile onto the fused W*C lane axis
    # (lane = w*C + c), and fold the horizontal SAME-padding boundary into the
    # weights: left-neighbour taps (kx=0 -> rows 0,3,6) zeroed at w==0 lanes,
    # right-neighbour taps (kx=2 -> rows 2,5,8) zeroed at w==W-1 lanes.
    lane_w = jnp.arange(WC) // C                    # spatial w of each lane
    kx = jnp.arange(9) % 3                          # 0=left, 1=centre, 2=right tap
    kill = (((kx[:, None] == 0) & (lane_w[None, :] == 0)) |
            ((kx[:, None] == 2) & (lane_w[None, :] == W - 1)))

    def make_taps(w_dw, scale):
        t = jnp.tile((w_dw * scale).reshape(9, C), (1, W))        # (9, WC)
        return jnp.where(kill, 0.0, t)

    dw = jnp.stack([make_taps(w_dw1, s1[0]), make_taps(w_dw2, s4[0])])   # (2, 9, WC)

    # Fuse project + BN2 + expand + BN3 into a single (C, C) matrix and replicate
    # it block-diagonally over the W positions of the lane axis (groups=2 block
    # structure is kept inside w_fused; negligible at C=16).
    w_fused = ((w_proj * s2[0]) @ w_exp) * s3[0]                   # (C, C)
    b_fused = (b2[0] @ w_exp) * s3[0] + b3[0]                      # (C,)
    w_big = jnp.kron(jnp.eye(W, dtype=jnp.float32), w_fused).astype(jnp.bfloat16)

    biases = jnp.stack([jnp.tile(b1[0], W),                        # after conv1
                        jnp.tile(b_fused, W),                      # after fused 1x1
                        jnp.tile(b4[0], W)])                       # after conv2

    kernel = functools.partial(_i2r_identity_kernel, C=C)

    flops = 2 * N * H * WC * WC + 2 * 2 * 9 * N * H * WC
    bytes_accessed = (N * H * WC * (2 + 4)        # bf16 in + f32 out slabs
                      + WC * WC * 2               # fused weight (bf16)
                      + (2 * 9 + 3) * WC * 4)     # taps + biases (f32)
    cost = pl.CostEstimate(flops=flops, transcendentals=0,
                           bytes_accessed=bytes_accessed)

    grid_spec = pltpu.PrefetchScalarGridSpec(
        num_scalar_prefetch=0,
        grid=(N,),
        in_specs=[
            pl.BlockSpec((1, H, WC), lambda b: (b, 0, 0)),   # input slab (bf16)
            pl.BlockSpec((2, 9, WC), lambda b: (0, 0, 0)),   # depthwise taps
            pl.BlockSpec((WC, WC), lambda b: (0, 0)),        # fused 1x1 (bf16)
            pl.BlockSpec((3, WC), lambda b: (0, 0)),         # packed biases
        ],
        out_specs=pl.BlockSpec((1, H, WC), lambda b: (b, 0, 0)),
    )

    out2 = pl.pallas_call(
        kernel,
        out_shape=jax.ShapeDtypeStruct((N, H, WC), jnp.float32),
        grid_spec=grid_spec,
        compiler_params=pltpu.CompilerParams(
            dimension_semantics=("parallel",)),
        cost_estimate=cost,
    )(x2, dw, w_big, biases)

    return jnp.transpose(out2.reshape(N, H, W, C), (0, 3, 1, 2))   # back to NCHW


# ----------------------------------------------------------------------------
# Deterministic parameter construction (shapes follow I2RBlock.__init__ with
# in_chs=out_chs=C, exp_ratio=1.0 -> oup=C, group_1x1=2).
# ----------------------------------------------------------------------------
def _grouped_1x1_to_dense(w_torch_style, groups):
    """torch Conv2d(groups=g) weight (Cout, Cin//g) -> dense (Cin, Cout) block-diag."""
    cout, cig = w_torch_style.shape
    cog = cout // groups
    cin = cig * groups
    Wd = jnp.zeros((cin, cout), w_torch_style.dtype)
    for g in range(groups):
        Wd = Wd.at[g * cig:(g + 1) * cig, g * cog:(g + 1) * cog].set(
            w_torch_style[g * cog:(g + 1) * cog, :].T)
    return Wd


def _fold_bn(kg, kb, km, kv, n, eps=1e-5):
    gamma = 1.0 + 0.1 * jax.random.normal(kg, (n,), jnp.float32)
    beta = 0.1 * jax.random.normal(kb, (n,), jnp.float32)
    mean = 0.1 * jax.random.normal(km, (n,), jnp.float32)
    var = jnp.abs(jax.random.normal(kv, (n,), jnp.float32)) + 1.0
    scale = gamma / jnp.sqrt(var + eps)
    bias = beta - mean * scale
    return scale.reshape(1, n), bias.reshape(1, n)


def init_params(key, C, groups=2):
    ks = jax.random.split(key, 20)
    w_dw1 = 0.2 * jax.random.normal(ks[0], (3, 3, C), jnp.float32)
    s1, b1 = _fold_bn(ks[1], ks[2], ks[3], ks[4], C)
    w_proj_t = 0.2 * jax.random.normal(ks[5], (C, C // groups), jnp.float32)
    w_proj = _grouped_1x1_to_dense(w_proj_t, groups)                 # (C, C)
    s2, b2 = _fold_bn(ks[6], ks[7], ks[8], ks[9], C)
    w_exp_t = 0.2 * jax.random.normal(ks[10], (C, C // groups), jnp.float32)
    w_exp = _grouped_1x1_to_dense(w_exp_t, groups)                   # (C, C)
    s3, b3 = _fold_bn(ks[11], ks[12], ks[13], ks[14], C)
    w_dw2 = 0.2 * jax.random.normal(ks[15], (3, 3, C), jnp.float32)
    s4, b4 = _fold_bn(ks[16], ks[17], ks[18], ks[19], C)
    return (w_dw1, s1, b1, w_proj, s2, b2, w_exp, s3, b3, w_dw2, s4, b4)


# ----------------------------------------------------------------------------
# Pure-JAX f32 reference (same folded parameters) for a correctness check.
# ----------------------------------------------------------------------------
def reference_forward(x_nchw, params):
    (w_dw1, s1, b1, w_proj, s2, b2, w_exp, s3, b3, w_dw2, s4, b4) = params
    x = jnp.transpose(x_nchw, (0, 2, 3, 1)).astype(jnp.float32)
    C = x.shape[-1]

    def dwconv(z, w):
        return lax.conv_general_dilated(
            z, w.reshape(3, 3, 1, C), (1, 1), 'SAME',
            dimension_numbers=('NHWC', 'HWIO', 'NHWC'),
            feature_group_count=C)

    y = jnp.maximum(dwconv(x, w_dw1) * s1[0] + b1[0], 0.0)
    y = jnp.einsum('nhwc,cd->nhwd', y, w_proj) * s2[0] + b2[0]
    y = jnp.maximum(jnp.einsum('nhwc,cd->nhwd', y, w_exp) * s3[0] + b3[0], 0.0)
    y = dwconv(y, w_dw2) * s4[0] + b4[0]
    y = y + x
    return jnp.transpose(y, (0, 3, 1, 2))


if __name__ == "__main__":
    key = jax.random.PRNGKey(0)
    k_x, k_p = jax.random.split(key)

    N, C, H, W = 2, 16, 16, 16          # in_chs = out_chs = 16, stride 1
    x = jax.random.normal(k_x, (N, C, H, W), jnp.float32)   # NCHW like PyTorch
    # Quantize the input once to bf16 (the kernel DMAs bf16 slabs); feed the same
    # rounded input to the reference so only the matmul's bf16 weights differ.
    x = x.astype(jnp.bfloat16).astype(jnp.float32)
    params = init_params(k_p, C, groups=2)

    out = jax.block_until_ready(i2r_block_forward(x, params))
    ref = jax.block_until_ready(reference_forward(x, params))

    assert out.shape == (N, C, H, W)
    err = float(jnp.max(jnp.abs(out - ref)))
    # The fused 1x1 matmul uses bf16 operands (f32 accumulate), so allow a
    # slightly looser tolerance than pure f32.
    assert jnp.allclose(out, ref, rtol=5e-3, atol=5e-3), f"max abs err {err}"

    print("KERNEL_OK")
</pallas_src>

<mosaic_0001>
module attributes {stable_mosaic.version = 11 : i64} {
  func.func @_i2r_identity_kernel(%arg0: i32, %arg1: memref<1x16x256xbf16, #tpu.memory_space<vmem>>, %arg2: memref<2x9x256xf32, #tpu.memory_space<vmem>>, %arg3: memref<256x256xbf16, #tpu.memory_space<vmem>>, %arg4: memref<3x256xf32, #tpu.memory_space<vmem>>, %arg5: memref<1x16x256xf32, #tpu.memory_space<vmem>>) attributes {dimension_semantics = [#tpu.dimension_semantics<parallel>], iteration_bounds = array<i64: 2>, scalar_prefetch = 0 : i64, scratch_operands = 0 : i64, tpu.core_type = #tpu.core_type<tc>, window_params = [{transform_indices = @transform_0, window_bounds = array<i64: 1, 16, 256>}, {pipeline_mode = #tpu.pipeline_mode<synchronous>, transform_indices = @transform_1, window_bounds = array<i64: 2, 9, 256>}, {pipeline_mode = #tpu.pipeline_mode<synchronous>, transform_indices = @transform_2, window_bounds = array<i64: 256, 256>}, {pipeline_mode = #tpu.pipeline_mode<synchronous>, transform_indices = @transform_3, window_bounds = array<i64: 3, 256>}, {transform_indices = @transform_4, window_bounds = array<i64: 1, 16, 256>}]} {
    %c0 = arith.constant 0 : index
    %c0_0 = arith.constant 0 : index
    %c0_1 = arith.constant 0 : index
    %0 = vector.load %arg1[%c0, %c0_0, %c0_1] : memref<1x16x256xbf16, #tpu.memory_space<vmem>>, vector<1x16x256xbf16>
    %1 = vector.shape_cast %0 : vector<1x16x256xbf16> to vector<16x256xbf16>
    %2 = arith.extf %1 : vector<16x256xbf16> to vector<16x256xf32>
    %c0_2 = arith.constant 0 : index
    %c0_3 = arith.constant 0 : index
    %c0_4 = arith.constant 0 : index
    %3 = vector.load %arg2[%c0_2, %c0_3, %c0_4] : memref<2x9x256xf32, #tpu.memory_space<vmem>>, vector<2x9x256xf32>
    %c0_5 = arith.constant 0 : index
    %c0_6 = arith.constant 0 : index
    %4 = vector.load %arg4[%c0_5, %c0_6] : memref<3x256xf32, #tpu.memory_space<vmem>>, vector<3x256xf32>
    %5 = vector.extract_strided_slice %3 {offsets = [0, 0, 0], sizes = [1, 9, 256], strides = [1, 1, 1]} : vector<2x9x256xf32> to vector<1x9x256xf32>
    %6 = vector.shape_cast %5 : vector<1x9x256xf32> to vector<9x256xf32>
    %c16_i32 = arith.constant 16 : i32
    %7 = tpu.dynamic_rotate %2 by %c16_i32 dim 1 : vector<16x256xf32>, i32 -> vector<16x256xf32>
    %c240_i32 = arith.constant 240 : i32
    %8 = tpu.dynamic_rotate %2 by %c240_i32 dim 1 : vector<16x256xf32>, i32 -> vector<16x256xf32>
    %9 = vector.extract_strided_slice %6 {offsets = [0, 0], sizes = [1, 256], strides = [1, 1]} : vector<9x256xf32> to vector<1x256xf32>
    %10 = vector.broadcast %9 : vector<1x256xf32> to vector<16x256xf32>
    %11 = arith.mulf %7, %10 : vector<16x256xf32>
    %12 = vector.extract_strided_slice %6 {offsets = [1, 0], sizes = [1, 256], strides = [1, 1]} : vector<9x256xf32> to vector<1x256xf32>
    %13 = vector.broadcast %12 : vector<1x256xf32> to vector<16x256xf32>
    %14 = arith.mulf %2, %13 : vector<16x256xf32>
    %15 = arith.addf %11, %14 : vector<16x256xf32>
    %16 = vector.extract_strided_slice %6 {offsets = [2, 0], sizes = [1, 256], strides = [1, 1]} : vector<9x256xf32> to vector<1x256xf32>
    %17 = vector.broadcast %16 : vector<1x256xf32> to vector<16x256xf32>
    %18 = arith.mulf %8, %17 : vector<16x256xf32>
    %19 = arith.addf %15, %18 : vector<16x256xf32>
    %20 = vector.extract_strided_slice %6 {offsets = [3, 0], sizes = [1, 256], strides = [1, 1]} : vector<9x256xf32> to vector<1x256xf32>
    %21 = vector.broadcast %20 : vector<1x256xf32> to vector<16x256xf32>
    %22 = arith.mulf %7, %21 : vector<16x256xf32>
    %23 = vector.extract_strided_slice %6 {offsets = [4, 0], sizes = [1, 256], strides = [1, 1]} : vector<9x256xf32> to vector<1x256xf32>
    %24 = vector.broadcast %23 : vector<1x256xf32> to vector<16x256xf32>
    %25 = arith.mulf %2, %24 : vector<16x256xf32>
    %26 = arith.addf %22, %25 : vector<16x256xf32>
    %27 = vector.extract_strided_slice %6 {offsets = [5, 0], sizes = [1, 256], strides = [1, 1]} : vector<9x256xf32> to vector<1x256xf32>
    %28 = vector.broadcast %27 : vector<1x256xf32> to vector<16x256xf32>
    %29 = arith.mulf %8, %28 : vector<16x256xf32>
    %30 = arith.addf %26, %29 : vector<16x256xf32>
    %31 = vector.extract_strided_slice %6 {offsets = [6, 0], sizes = [1, 256], strides = [1, 1]} : vector<9x256xf32> to vector<1x256xf32>
    %32 = vector.broadcast %31 : vector<1x256xf32> to vector<16x256xf32>
    %33 = arith.mulf %7, %32 : vector<16x256xf32>
    %34 = vector.extract_strided_slice %6 {offsets = [7, 0], sizes = [1, 256], strides = [1, 1]} : vector<9x256xf32> to vector<1x256xf32>
    %35 = vector.broadcast %34 : vector<1x256xf32> to vector<16x256xf32>
    %36 = arith.mulf %2, %35 : vector<16x256xf32>
    %37 = arith.addf %33, %36 : vector<16x256xf32>
    %38 = vector.extract_strided_slice %6 {offsets = [8, 0], sizes = [1, 256], strides = [1, 1]} : vector<9x256xf32> to vector<1x256xf32>
    %39 = vector.broadcast %38 : vector<1x256xf32> to vector<16x256xf32>
    %40 = arith.mulf %8, %39 : vector<16x256xf32>
    %41 = arith.addf %37, %40 : vector<16x256xf32>
    %42 = tpu.iota {dimensions = array<i32: 0>} : vector<16x256xi32>
    %c1_i32 = arith.constant 1 : i32
    %43 = vector.broadcast %c1_i32 : i32 to vector<16x256xi32>
    %44 = arith.cmpi sge, %42, %43 : vector<16x256xi32>
    %c1_i32_7 = arith.constant 1 : i32
    %45 = tpu.dynamic_rotate %19 by %c1_i32_7 dim 0 : vector<16x256xf32>, i32 -> vector<16x256xf32>
    %cst = arith.constant 0.000000e+00 : f32
    %46 = vector.broadcast %cst : f32 to vector<16x256xf32>
    %47 = arith.select %44, %45, %46 : vector<16x256xi1>, vector<16x256xf32>
    %c15_i32 = arith.constant 15 : i32
    %48 = vector.broadcast %c15_i32 : i32 to vector<16x256xi32>
    %49 = arith.cmpi slt, %42, %48 : vector<16x256xi32>
    %c15_i32_8 = arith.constant 15 : i32
    %50 = tpu.dynamic_rotate %41 by %c15_i32_8 dim 0 : vector<16x256xf32>, i32 -> vector<16x256xf32>
    %cst_9 = arith.constant 0.000000e+00 : f32
    %51 = vector.broadcast %cst_9 : f32 to vector<16x256xf32>
    %52 = arith.select %49, %50, %51 : vector<16x256xi1>, vector<16x256xf32>
    %53 = arith.addf %47, %30 : vector<16x256xf32>
    %54 = arith.addf %53, %52 : vector<16x256xf32>
    %55 = vector.extract_strided_slice %4 {offsets = [0, 0], sizes = [1, 256], strides = [1, 1]} : vector<3x256xf32> to vector<1x256xf32>
    %56 = vector.broadcast %55 : vector<1x256xf32> to vector<16x256xf32>
    %57 = arith.addf %54, %56 : vector<16x256xf32>
    %cst_10 = arith.constant 0.000000e+00 : f32
    %58 = vector.broadcast %cst_10 : f32 to vector<16x256xf32>
    %59 = arith.maximumf %57, %58 : vector<16x256xf32>
    %60 = arith.truncf %59 : vector<16x256xf32> to vector<16x256xbf16>
    %c0_11 = arith.constant 0 : index
    %c0_12 = arith.constant 0 : index
    %61 = vector.load %arg3[%c0_11, %c0_12] : memref<256x256xbf16, #tpu.memory_space<vmem>>, vector<256x256xbf16>
    %cst_13 = arith.constant dense<0.000000e+00> : vector<16x256xf32>
    %62 = tpu.matmul %60, %61, %cst_13 {dimension_numbers = #tpu.dot_dimension_numbers<[1], [0], [0], [1], [0, 0, 1, 1], [], []>} : vector<16x256xbf16>, vector<256x256xbf16>, vector<16x256xf32> -> vector<16x256xf32>
    %63 = vector.extract_strided_slice %4 {offsets = [1, 0], sizes = [1, 256], strides = [1, 1]} : vector<3x256xf32> to vector<1x256xf32>
    %64 = vector.broadcast %63 : vector<1x256xf32> to vector<16x256xf32>
    %65 = arith.addf %62, %64 : vector<16x256xf32>
    %cst_14 = arith.constant 0.000000e+00 : f32
    %66 = vector.broadcast %cst_14 : f32 to vector<16x256xf32>
    %67 = arith.maximumf %65, %66 : vector<16x256xf32>
    %68 = vector.extract_strided_slice %3 {offsets = [1, 0, 0], sizes = [1, 9, 256], strides = [1, 1, 1]} : vector<2x9x256xf32> to vector<1x9x256xf32>
    %69 = vector.shape_cast %68 : vector<1x9x256xf32> to vector<9x256xf32>
    %c16_i32_15 = arith.constant 16 : i32
    %70 = tpu.dynamic_rotate %67 by %c16_i32_15 dim 1 : vector<16x256xf32>, i32 -> vector<16x256xf32>
    %c240_i32_16 = arith.constant 240 : i32
    %71 = tpu.dynamic_rotate %67 by %c240_i32_16 dim 1 : vector<16x256xf32>, i32 -> vector<16x256xf32>
    %72 = vector.extract_strided_slice %69 {offsets = [0, 0], sizes = [1, 256], strides = [1, 1]} : vector<9x256xf32> to vector<1x256xf32>
    %73 = vector.broadcast %72 : vector<1x256xf32> to vector<16x256xf32>
    %74 = arith.mulf %70, %73 : vector<16x256xf32>
    %75 = vector.extract_strided_slice %69 {offsets = [1, 0], sizes = [1, 256], strides = [1, 1]} : vector<9x256xf32> to vector<1x256xf32>
    %76 = vector.broadcast %75 : vector<1x256xf32> to vector<16x256xf32>
    %77 = arith.mulf %67, %76 : vector<16x256xf32>
    %78 = arith.addf %74, %77 : vector<16x256xf32>
    %79 = vector.extract_strided_slice %69 {offsets = [2, 0], sizes = [1, 256], strides = [1, 1]} : vector<9x256xf32> to vector<1x256xf32>
    %80 = vector.broadcast %79 : vector<1x256xf32> to vector<16x256xf32>
    %81 = arith.mulf %71, %80 : vector<16x256xf32>
    %82 = arith.addf %78, %81 : vector<16x256xf32>
    %83 = vector.extract_strided_slice %69 {offsets = [3, 0], sizes = [1, 256], strides = [1, 1]} : vector<9x256xf32> to vector<1x256xf32>
    %84 = vector.broadcast %83 : vector<1x256xf32> to vector<16x256xf32>
    %85 = arith.mulf %70, %84 : vector<16x256xf32>
    %86 = vector.extract_strided_slice %69 {offsets = [4, 0], sizes = [1, 256], strides = [1, 1]} : vector<9x256xf32> to vector<1x256xf32>
    %87 = vector.broadcast %86 : vector<1x256xf32> to vector<16x256xf32>
    %88 = arith.mulf %67, %87 : vector<16x256xf32>
    %89 = arith.addf %85, %88 : vector<16x256xf32>
    %90 = vector.extract_strided_slice %69 {offsets = [5, 0], sizes = [1, 256], strides = [1, 1]} : vector<9x256xf32> to vector<1x256xf32>
    %91 = vector.broadcast %90 : vector<1x256xf32> to vector<16x256xf32>
    %92 = arith.mulf %71, %91 : vector<16x256xf32>
    %93 = arith.addf %89, %92 : vector<16x256xf32>
    %94 = vector.extract_strided_slice %69 {offsets = [6, 0], sizes = [1, 256], strides = [1, 1]} : vector<9x256xf32> to vector<1x256xf32>
    %95 = vector.broadcast %94 : vector<1x256xf32> to vector<16x256xf32>
    %96 = arith.mulf %70, %95 : vector<16x256xf32>
    %97 = vector.extract_strided_slice %69 {offsets = [7, 0], sizes = [1, 256], strides = [1, 1]} : vector<9x256xf32> to vector<1x256xf32>
    %98 = vector.broadcast %97 : vector<1x256xf32> to vector<16x256xf32>
    %99 = arith.mulf %67, %98 : vector<16x256xf32>
    %100 = arith.addf %96, %99 : vector<16x256xf32>
    %101 = vector.extract_strided_slice %69 {offsets = [8, 0], sizes = [1, 256], strides = [1, 1]} : vector<9x256xf32> to vector<1x256xf32>
    %102 = vector.broadcast %101 : vector<1x256xf32> to vector<16x256xf32>
    %103 = arith.mulf %71, %102 : vector<16x256xf32>
    %104 = arith.addf %100, %103 : vector<16x256xf32>
    %105 = tpu.iota {dimensions = array<i32: 0>} : vector<16x256xi32>
    %c1_i32_17 = arith.constant 1 : i32
    %106 = vector.broadcast %c1_i32_17 : i32 to vector<16x256xi32>
    %107 = arith.cmpi sge, %105, %106 : vector<16x256xi32>
    %c1_i32_18 = arith.constant 1 : i32
    %108 = tpu.dynamic_rotate %82 by %c1_i32_18 dim 0 : vector<16x256xf32>, i32 -> vector<16x256xf32>
    %cst_19 = arith.constant 0.000000e+00 : f32
    %109 = vector.broadcast %cst_19 : f32 to vector<16x256xf32>
    %110 = arith.select %107, %108, %109 : vector<16x256xi1>, vector<16x256xf32>
    %c15_i32_20 = arith.constant 15 : i32
    %111 = vector.broadcast %c15_i32_20 : i32 to vector<16x256xi32>
    %112 = arith.cmpi slt, %105, %111 : vector<16x256xi32>
    %c15_i32_21 = arith.constant 15 : i32
    %113 = tpu.dynamic_rotate %104 by %c15_i32_21 dim 0 : vector<16x256xf32>, i32 -> vector<16x256xf32>
    %cst_22 = arith.constant 0.000000e+00 : f32
    %114 = vector.broadcast %cst_22 : f32 to vector<16x256xf32>
    %115 = arith.select %112, %113, %114 : vector<16x256xi1>, vector<16x256xf32>
    %116 = arith.addf %110, %93 : vector<16x256xf32>
    %117 = arith.addf %116, %115 : vector<16x256xf32>
    %118 = vector.extract_strided_slice %4 {offsets = [2, 0], sizes = [1, 256], strides = [1, 1]} : vector<3x256xf32> to vector<1x256xf32>
    %119 = vector.broadcast %118 : vector<1x256xf32> to vector<16x256xf32>
    %120 = arith.addf %117, %119 : vector<16x256xf32>
    %121 = arith.addf %120, %2 : vector<16x256xf32>
    %c0_23 = arith.constant 0 : index
    %c0_24 = arith.constant 0 : index
    %c0_25 = arith.constant 0 : index
    %122 = vector.load %arg5[%c0_23, %c0_24, %c0_25] : memref<1x16x256xf32, #tpu.memory_space<vmem>>, vector<1x16x256xf32>
    %123 = vector.shape_cast %122 : vector<1x16x256xf32> to vector<16x256xf32>
    %124 = vector.shape_cast %121 : vector<16x256xf32> to vector<1x16x256xf32>
    tpu.vector_store %arg5[%c0_23, %c0_24, %c0_25], %124 {strides = array<i32>} : memref<1x16x256xf32, #tpu.memory_space<vmem>>, vector<1x16x256xf32>,
    return
  }
  func.func @transform_0(%arg0: i32) -> (i32, i32, i32) {
    %c0_i32 = arith.constant 0 : i32
    %c0_i32_0 = arith.constant 0 : i32
    %c0_i32_1 = arith.constant 0 : i32
    return %arg0, %c0_i32, %c0_i32_0 : i32, i32, i32
  }
  func.func @transform_1(%arg0: i32) -> (i32, i32, i32) {
    %c0_i32 = arith.constant 0 : i32
    %c0_i32_0 = arith.constant 0 : i32
    %c0_i32_1 = arith.constant 0 : i32
    %c0_i32_2 = arith.constant 0 : i32
    return %c0_i32, %c0_i32_0, %c0_i32_1 : i32, i32, i32
  }
  func.func @transform_2(%arg0: i32) -> (i32, i32) {
    %c0_i32 = arith.constant 0 : i32
    %c0_i32_0 = arith.constant 0 : i32
    %c0_i32_1 = arith.constant 0 : i32
    return %c0_i32, %c0_i32_0 : i32, i32
  }
  func.func @transform_3(%arg0: i32) -> (i32, i32) {
    %c0_i32 = arith.constant 0 : i32
    %c0_i32_0 = arith.constant 0 : i32
    %c0_i32_1 = arith.constant 0 : i32
    return %c0_i32, %c0_i32_0 : i32, i32
  }
  func.func @transform_4(%arg0: i32) -> (i32, i32, i32) {
    %c0_i32 = arith.constant 0 : i32
    %c0_i32_0 = arith.constant 0 : i32
    %c0_i32_1 = arith.constant 0 : i32
    return %arg0, %c0_i32, %c0_i32_0 : i32, i32, i32
  }
}

</mosaic_0001>

<bundles_post_ra>
// kernel: tpu_custom_call.1
= control target key start
LH: loop header
LB: loop body
LE: loop exit
PB: predicated region body
PF: predicated region fallthrough
CT: control target
= control target key end

     0   :  { %9 = vsyncpa [#allocation3], 0  ;;  %s1689_s0 = inlined_call_operand.vmem [shape: bf16[2,16,256], index: 0, kind: input, shape index: {}]   ;;  %s1690_s1 = inlined_call_operand.vmem [shape: f32[2,9,256], index: 1, kind: input, shape index: {}]   ;;  %s1691_s2 = inlined_call_operand.hbm [shape: bf16[256,256], index: 2, kind: input, shape index: {}]   ;;  %s1692_s3 = inlined_call_operand.vmem [shape: f32[3,256], index: 3, kind: input, shape index: {}]   ;;  %s1693_s4 = inlined_call_operand.hbm [shape: f32[2,16,256], index: 4, kind: output, shape index: {}]  }
   0x1   :  { %10 = vsyncpa [#allocation4], 0 }
   0x2   :  { %12 = vsyncpa [#allocation4 + $0x1], 0  ;;  %s1276_s15 = smov 0   ;;  %s1278_s16 = smov 0  }
   0x3   :  { %s1280_s17 = smov 0   ;;  %s1282_s18 = smov 0  }
   0x4 LB: > { %s1297_s19 = sadd.s32 4294967295, %s1243_s18   ;;  %s892_s20 = sadd.s32 4294967294, %s1243_s18   ;;  %s1243_s18 = sphi %s1282_s18, %s1699_s18   ;;  %s1239_s17 = sphi %s1280_s17, %s1698_s17   ;;  %s1235_s16 = sphi %s1278_s16, %s1697_s16   ;;  %s1231_s15 = sphi %s1276_s15, %s1696_s15  }
   0x5   : > { %s1301_s21 = sadd.s32 1, %s1243_s18   ;;  %s114_s22 = sadd.s32 1, %s1239_s17 }
   0x6   : > { %s111_s23 = ssub.s32 %s1243_s18, %s1301_s21  ;;  %p124_p0 = scmp.ne.s32.totalorder %s1239_s17, %s1235_s16 }
   0x7   : > { %p112_p1 = scmp.eq.s32.totalorder %s111_s23, 0  ;;  %p125_p2 = scmp.eq.s32.totalorder %s1297_s19, 1 }
   0x8   : > { %p130_p3 = scmp.ne.s32.totalorder %s1235_s16, %s1231_s15  ;;  %p131_p4 = scmp.eq.s32.totalorder %s892_s20, 1 }
   0x9   : > { %s1312_s24 = scalar_select %p112_p1, %s1239_s17, %s114_s22  }
   0xa   : > { %p1314_p5 = por %p125_p2, %p124_p0  ;;  %p1318_p6 = por %p131_p4, %p130_p3 }
   0xb   : > { %p893_p7 = scmp.ge.s32.totalorder %s1243_s18, 1  ;;  %p138_p8 = scmp.lt.s32.totalorder %s1243_s18, 3 }
   0xc   : > { %p1082_p9 = scmp.eq.s32.totalorder %s1297_s19, 0  ;;  %s152_s29 = sshll.u32 %s1691_s2, 4  ;;  %s153_s29 = int_to_ptr.hbm [resolvable:$true] %s152_s29 }
   0xd   : > { %p139_p10 = pnand %p893_p7, %p138_p8  ;;  %s1245_s30 = smov [#allocation2]  }
   0xe   : > { %s154_s5 = sshll.u32 %s1245_s30, 4  ;;  %s1246_s6 = smov 128   ;;  %s155_s5 = int_to_ptr.vmem [resolvable:$true] %s154_s5 }
   0xf   : > { %p1074_p11 = pneg %p139_p10  ;;  %s1247_s7 = smov 8  }
  0x10   : > { %181 = sbr.rel (%p139_p10) target bundleno = 479 (0x1df), region = 36 }
  0x11   : > { %p1075_p12 = pnand %p1082_p9, %p1074_p11 }
  0x13   : > { %1077 = dma.hbm_to_vmem [thread:$0]  (!%p1075_p12), %s153_s29, 4096, %s155_s5, [#allocation3], %s1246_s6, %s1246_s6, %s1247_s7  }
  0x15   : > { %1222 = dma.done.wait (%p1082_p9), [#allocation3], 4096  }
  0x16   : > { %1224 = vsyncadd (%p1082_p9), [#allocation3], 4294963200  ;;  %p208_p13 = scmp.lt.s32.totalorder %s1297_s19, 1  ;;  %s1248_s13 = smov 112   ;;  %v959_v8 = vld [vmem:[#allocation2 + $0x70] sm:$0xf]  ;;  %v236_v32 = vlaneseq }
  0x17   : > { %s1249_s14 = smov 16   ;;  %v1050_v9 = vld [vmem:[#allocation2 + $0x74] sm:$0xf0]  ;;  %v1023_v10 = vld [vmem:[#allocation2 + $0xf0] sm:$0xf]  ;;  %v1358_v33 = vld [vmem:[%s1690_s1] sm:$0xff] }
  0x18   : > { %s209_s8 = scalar_select %p208_p13, %s1297_s19, 1  ;;  %v960_v11 = vor.u32 %v1050_v9, %v959_v8  ;;  %v1066_v12 = vld [vmem:[#allocation2 + $0xf4] sm:$0xf0]  ;;  %v1049_v13 = vld [vmem:[#allocation2 + $0x74] sm:$0xf]  ;;  %v1363_v43 = vld [vmem:[%s1690_s1 + $0x8] sm:$0xff] }
  0x19   : > { %v961_v14 = vld [vmem:[#allocation2 + $0x78] sm:$0xf0]  ;;  %v1024_v15 = vor.u32 %v1066_v12, %v1023_v10  ;;  %v1065_v17 = vld [vmem:[#allocation2 + $0xf4] sm:$0xf]  ;;  %v951_v20 = vld [vmem:[#allocation2 + $0x60] sm:$0xf] }
  0x1a   : > { %s1034_s9 = sshll.u32 %s209_s8, 4  ;;  %v964_v16 = vor.u32 %v1049_v13, %v961_v14  ;;  %v1025_v18 = vld [vmem:[#allocation2 + $0xf8] sm:$0xf0]  ;;  %590 = vmatpush.bf16.msra.mxu0 %v960_v11  ;;  %v1048_v21 = vld [vmem:[#allocation2 + $0x64] sm:$0xf0]  ;;  %v1366_v44 = vand.u32 127, %v236_v32 }
  0x1b   : > { %s212_s12 = scalar_lea.vmem %s1689_s0, %s1034_s9  ;;  %v1028_v19 = vor.u32 %v1065_v17, %v1025_v18  ;;  %v1015_v22 = vld [vmem:[#allocation2 + $0xe0] sm:$0xf]  ;;  %604 = vmatpush.bf16.msra.mxu1 %v1024_v15  ;;  %v952_v23 = vor.u32 %v1048_v21, %v951_v20  ;;  %v1064_v24 = vld [vmem:[#allocation2 + $0xe4] sm:$0xf0]  ;;  %v1047_v25 = vld [vmem:[#allocation2 + $0x64] sm:$0xf] }
  0x1c   : > { %v213_v0 = vld [vmem:[%s212_s12] sm:$0xff]  ;;  %v214_v1 = vld [vmem:[%s212_s12 + $0x8] sm:$0xff]  ;;  %618 = vmatpush.bf16.msra.mxu2 %v964_v16  ;;  %v1016_v27 = vor.u32 %v1064_v24, %v1015_v22  ;;  %v943_v34 = vld [vmem:[#allocation2 + $0x50] sm:$0xf]  ;;  %v272_v45 = vperm.slane %v1358_v33, 2  ;;  %v273_v56 = vperm.slane %v1363_v43, 2 }
  0x1d   : > { %v1339_v2 = vunpack.c.l.bf16 %v213_v0  ;;  %v1341_v3 = vunpack.c.l.bf16 %v214_v1  ;;  %v1345_v5 = vunpack.c.h.bf16 %v213_v0  ;;  %v1347_v6 = vunpack.c.h.bf16 %v214_v1  ;;  %v953_v26 = vld [vmem:[#allocation2 + $0x68] sm:$0xf0]  ;;  %632 = vmatpush.bf16.msra.mxu3 %v1028_v19  ;;  %v1063_v29 = vld [vmem:[#allocation2 + $0xe4] sm:$0xf]  ;;  %v1046_v35 = vld [vmem:[#allocation2 + $0x54] sm:$0xf0] }
  0x1e   : > { %v956_v28 = vor.u32 %v1047_v25, %v953_v26  ;;  %v1017_v30 = vld [vmem:[#allocation2 + $0xe8] sm:$0xf0]  ;;  %591 = vmatpush.bf16.msra.mxu0 %v952_v23  ;;  %v1007_v36 = vld [vmem:[#allocation2 + $0xd0] sm:$0xf]  ;;  %v1062_v37 = vld [vmem:[#allocation2 + $0xd4] sm:$0xf0]  ;;  %v944_v38 = vor.u32 %v1046_v35, %v943_v34 }
  0x1f   : > { %v1133_v4 = vpack.i.bf16 %v1341_v3, %v1339_v2  ;;  %v1138_v7 = vpack.i.bf16 %v1347_v6, %v1345_v5  ;;  %v1020_v31 = vor.u32 %v1063_v29, %v1017_v30  ;;  %605 = vmatpush.bf16.msra.mxu1 %v1016_v27  ;;  %v1008_v39 = vor.u32 %v1062_v37, %v1007_v36  ;;  %v1045_v40 = vld [vmem:[#allocation2 + $0x54] sm:$0xf]  ;;  %v945_v41 = vld [vmem:[#allocation2 + $0x58] sm:$0xf0]  ;;  %v935_v49 = vld [vmem:[#allocation2 + $0x40] sm:$0xf] }
  0x20   : > { %619 = vmatpush.bf16.msra.mxu2 %v956_v28  ;;  %v1061_v42 = vld [vmem:[#allocation2 + $0xd4] sm:$0xf]  ;;  %v948_v46 = vor.u32 %v1045_v40, %v945_v41  ;;  %v1009_v47 = vld [vmem:[#allocation2 + $0xd8] sm:$0xf0]  ;;  %v1044_v50 = vld [vmem:[#allocation2 + $0x44] sm:$0xf0] }
  0x21   : > { %1134 = vrot.lane.b32.xlu1 %v1133_v4, %s1248_s13  ;;  %1124 = vrot.lane.b32.xlu0 %v1133_v4, %s1249_s14  ;;  %v1012_v48 = vor.u32 %v1061_v42, %v1009_v47  ;;  %v999_v51 = vld [vmem:[#allocation2 + $0xc0] sm:$0xf]  ;;  %v936_v52 = vor.u32 %v1044_v50, %v935_v49  ;;  %v1060_v53 = vld [vmem:[#allocation2 + $0xc4] sm:$0xf0]  ;;  %v1043_v54 = vld [vmem:[#allocation2 + $0x44] sm:$0xf] }
  0x22   : > { %633 = vmatpush.bf16.msra.mxu3 %v1020_v31  ;;  %592 = vmatpush.bf16.msra.mxu0 %v944_v38  ;;  %v937_v55 = vld [vmem:[#allocation2 + $0x48] sm:$0xf0]  ;;  %v298_v57 = vperm.slane %v1358_v33, 5  ;;  %v1000_v58 = vor.u32 %v1060_v53, %v999_v51  ;;  %v1059_v60 = vld [vmem:[#allocation2 + $0xc4] sm:$0xf]  ;;  %v299_v62 = vperm.slane %v1363_v43, 5 }
  0x23   : > { %606 = vmatpush.bf16.msra.mxu1 %v1008_v39  ;;  %v940_v59 = vor.u32 %v1043_v54, %v937_v55  ;;  %v1001_v61 = vld [vmem:[#allocation2 + $0xc8] sm:$0xf0]  ;;  %v256_v63 = vperm.slane %v1358_v33, 0  ;;  %v257_v0 = vperm.slane %v1363_v43, 0  ;;  %v927_v4 = vld [vmem:[#allocation2 + $0x30] sm:$0xf] }
  0x24   : > { %620 = vmatpush.bf16.msra.mxu2 %v948_v46  ;;  %v1004_v1 = vor.u32 %v1059_v60, %v1001_v61  ;;  %v991_v8 = vld [vmem:[#allocation2 + $0xb0] sm:$0xf]  ;;  %v1058_v10 = vld [vmem:[#allocation2 + $0xb4] sm:$0xf0]  ;;  %v1041_v11 = vld [vmem:[#allocation2 + $0x34] sm:$0xf] }
  0x25   : > { %v929_v12 = vld [vmem:[#allocation2 + $0x38] sm:$0xf0]  ;;  %v992_v13 = vor.u32 %v1058_v10, %v991_v8  ;;  %v1057_v15 = vld [vmem:[#allocation2 + $0xb4] sm:$0xf]  ;;  %v919_v17 = vld [vmem:[#allocation2 + $0x20] sm:$0xf] }
  0x26   : > { %634 = vmatpush.bf16.msra.mxu3 %v1012_v48  ;;  %593 = vmatpush.bf16.msra.mxu0 %v936_v52  ;;  %v932_v14 = vor.u32 %v1041_v11, %v929_v12  ;;  %v993_v16 = vld [vmem:[#allocation2 + $0xb8] sm:$0xf0]  ;;  %v1040_v19 = vld [vmem:[#allocation2 + $0x24] sm:$0xf0]  ;;  %v983_v20 = vld [vmem:[#allocation2 + $0xa0] sm:$0xf] }
  0x27   : > { %607 = vmatpush.bf16.msra.mxu1 %v1000_v58  ;;  %v996_v18 = vor.u32 %v1057_v15, %v993_v16  ;;  %v1056_v21 = vld [vmem:[#allocation2 + $0xa4] sm:$0xf0]  ;;  %v920_v22 = vor.u32 %v1040_v19, %v919_v17  ;;  %v1039_v24 = vld [vmem:[#allocation2 + $0x24] sm:$0xf]  ;;  %v921_v25 = vld [vmem:[#allocation2 + $0x28] sm:$0xf0] }
  0x28   : > { %621 = vmatpush.bf16.msra.mxu2 %v940_v59  ;;  %v984_v23 = vor.u32 %v1056_v21, %v983_v20  ;;  %v1055_v26 = vld [vmem:[#allocation2 + $0xa4] sm:$0xf]  ;;  %v924_v27 = vor.u32 %v1039_v24, %v921_v25  ;;  %v985_v28 = vld [vmem:[#allocation2 + $0xa8] sm:$0xf0]  ;;  %v911_v29 = vld [vmem:[#allocation2 + $0x10] sm:$0xf] }
  0x29   : > { %1139 = vrot.lane.b32.xlu1 %v1138_v7, %s1248_s13  ;;  %1129 = vrot.lane.b32.xlu0 %v1138_v7, %s1249_s14  ;;  %v1042_v7 = vld [vmem:[#allocation2 + $0x34] sm:$0xf0]  ;;  %v988_v31 = vor.u32 %v1055_v26, %v985_v28  ;;  %v975_v34 = vld [vmem:[#allocation2 + $0x90] sm:$0xf]  ;;  %v1037_v36 = vld [vmem:[#allocation2 + $0x14] sm:$0xf] }
  0x2a   : > { %v928_v9 = vor.u32 %v1042_v7, %v927_v4  ;;  %635 = vmatpush.bf16.msra.mxu3 %v1004_v1  ;;  %v1038_v30 = vld [vmem:[#allocation2 + $0x14] sm:$0xf0]  ;;  %v913_v37 = vld [vmem:[#allocation2 + $0x18] sm:$0xf0]  ;;  %v1053_v38 = vld [vmem:[#allocation2 + $0x94] sm:$0xf] }
  0x2b   : > { %608 = vmatpush.bf16.msra.mxu1 %v992_v13  ;;  %v1054_v35 = vld [vmem:[#allocation2 + $0x94] sm:$0xf0]  ;;  %v977_v39 = vld [vmem:[#allocation2 + $0x98] sm:$0xf0]  ;;  %v262_v40 = vperm.slane %v1358_v33, 1  ;;  %v263_v41 = vperm.slane %v1363_v43, 1  ;;  %v912_v42 = vor.u32 %v1038_v30, %v911_v29  ;;  %v916_v50 = vor.u32 %v1037_v36, %v913_v37 }
  0x2c   : > { %594 = vmatpush.bf16.msra.mxu0 %v928_v9  ;;  %622 = vmatpush.bf16.msra.mxu2 %v932_v14  ;;  %v976_v46 = vor.u32 %v1054_v35, %v975_v34  ;;  %v903_v47 = vld [vmem:[#allocation2] sm:$0xf]  ;;  %vm251_vm0 = vcmp.lt.s32.totalorder %v1366_v44, 112  ;;  %v1036_v51 = vld [vmem:[#allocation2 + $0x4] sm:$0xf0]  ;;  %v288_v54 = vperm.slane %v1358_v33, 4  ;;  %v980_v58 = vor.u32 %v1053_v38, %v977_v39 }
  0x2d   : > { %v967_v52 = vld [vmem:[#allocation2 + $0x80] sm:$0xf]  ;;  %v1052_v53 = vld [vmem:[#allocation2 + $0x84] sm:$0xf0]  ;;  %v289_v55 = vperm.slane %v1363_v43, 4  ;;  %v282_v61 = vperm.slane %v1358_v33, 3  ;;  %v904_v10 = vor.u32 %v1036_v51, %v903_v47  ;;  %v1389_v12 = vmul.f32 %v263_v41, %v1345_v5 }
  0x2e   : > { %636 = vmatpush.bf16.msra.mxu3 %v996_v18  ;;  %v1035_v59 = vld [vmem:[#allocation2 + $0x4] sm:$0xf]  ;;  %v905_v60 = vld [vmem:[#allocation2 + $0x8] sm:$0xf0]  ;;  %v314_v1 = vperm.slane %v1358_v33, 7  ;;  %v283_v8 = vperm.slane %v1363_v43, 3  ;;  %v968_v11 = vor.u32 %v1052_v53, %v967_v52  ;;  %v1392_v13 = vmul.f32 %v262_v40, %v1341_v3 }
  0x2f   : > { %609 = vmatpush.bf16.msra.mxu1 %v984_v23  ;;  %v1051_v4 = vld [vmem:[#allocation2 + $0x84] sm:$0xf]  ;;  %v969_v7 = vld [vmem:[#allocation2 + $0x88] sm:$0xf0]  ;;  %v315_v9 = vperm.slane %v1363_v43, 7  ;;  %vm238_vm1 = vcmp.lt.s32.totalorder %v1366_v44, 16  ;;  %v908_v15 = vor.u32 %v1035_v59, %v905_v60  ;;  %v1396_v16 = vmul.f32 %v263_v41, %v1347_v6 }
  0x30   : > { %595 = vmatpush.bf16.msra.mxu0 %v920_v22  ;;  %623 = vmatpush.bf16.msra.mxu2 %v924_v27  ;;  %v308_v14 = vperm.slane %v1358_v33, 6  ;;  %v1399_v17 = vmul.f32 %v289_v55, %v1345_v5  ;;  %v1402_v18 = vmul.f32 %v288_v54, %v1341_v3  ;;  %v972_v19 = vor.u32 %v1051_v4, %v969_v7  ;;  %v1407_v20 = vld [vmem:[%s1692_s3] sm:$0x77]  ;;  %v1441_v41 = vld [vmem:[%s1690_s1 + $0x18] ss:$0 sm:$0xff]  ;;  %s205_s23 = sand.u32 1, %s1235_s16  }
  0x31   : > { %v1410_v21 = vmul.f32 %v289_v55, %v1347_v6  ;;  %v1413_v22 = vmul.f32 %v314_v1, %v1341_v3  ;;  %v264_v23 = vmul.f32 %v262_v40, %v1339_v2  ;;  %v1417_v24 = vshrl.u32 %v236_v32, 7  ;;  %v1143_v40 = vld [vmem:[%s1690_s1 + $0x10] ss:$0 sm:$0xff]  ;;  %s898_s27 = sshll.u32 %s205_s23, 5  ;;  %s1067_s28 = sshll.u32 %s1297_s19, 5 }
  0x32   : > { %637 = vmatpush.bf16.msra.mxu3 %v988_v31  ;;  %v309_v25 = vperm.slane %v1363_v43, 6  ;;  %v1421_v26 = vmul.f32 %v315_v9, %v1345_v5  ;;  %v1424_v27 = vmul.f32 %v315_v9, %v1347_v6  ;;  %v290_v28 = vmul.f32 %v288_v54, %v1339_v2  ;;  %s814_s5 = scalar_lea.hbm %s1693_s4, %s1067_s28  ;;  %s207_s19 = scalar_lea.vmem [#allocation5], %s898_s27 }
  0x33   : > { %610 = vmatpush.bf16.msra.mxu1 %v976_v46  ;;  %v1430_v32 = vmul.f32 %v314_v1, %v1339_v2  ;;  %v376_v35 = vperm.slane %v1407_v20, 0  ;;  %v1444_v47 = vadd.s32 8, %v1417_v24  ;;  %vm343_vm2 = vcmp.lt.s32.totalorder %v1417_v24, 1  ;;  %s815_s6 = sshll.u32 %s207_s19, 4  ;;  %s817_s7 = sshll.u32 %s814_s5, 4  ;;  %s816_s6 = int_to_ptr.vmem [resolvable:$true] %s815_s6  ;;  %s818_s7 = int_to_ptr.hbm [resolvable:$true] %s817_s7 }
  0x34   : > { %596 = vmatpush.bf16.msra.mxu0 %v912_v42  ;;  %624 = vmatpush.bf16.msra.mxu2 %v916_v50  ;;  %vm337_vm3 = vcmp.ge.s32.totalorder %v1417_v24, 1  ;;  %vm358_vm4 = vcmp.lt.s32.totalorder %v1417_v24, 7  ;;  %s803_s8 = scalar_lea.sflag [#allocation4], %s205_s23  ;;  %s1191_s9 = sshra.s32 %s818_s7, 4  ;;  %s1192_s9 = int_to_ptr.hbm [resolvable:$true] %s1191_s9 }
  0x35   : > { %vm353_vm5 = vcmp.lt.s32.totalorder %v1444_v47, 15  ;;  %s1193_s10 = scalar_lea.hbm %s1192_s9, 32  ;;  %p1198_p3 = scmp.lt.s32.totalorder %s1192_s9, %s1693_s4 }
  0x36   : > { %638 = vmatpush.bf16.msra.mxu3 %v980_v58  ;;  %v1461_v58 = vperm.slane %v376_v35, 0  ;;  %p1194_p0 = scmp.ne.s32.totalorder %s1192_s9, %s1193_s10 }
  0x37   : > { %611 = vmatpush.bf16.msra.mxu1 %v968_v11 }
  0x38   : > { %597 = vmatpush.bf16.msra.mxu0 %v904_v10  ;;  %625 = vmatpush.bf16.msra.mxu2 %v908_v15  ;;  %p1195_p1 = pnand %p1194_p0, %p1314_p5 }
  0x3a   : > { %639 = vmatpush.bf16.msra.mxu3 %v972_v19  ;;  %p1196_p2 = pneg %p1195_p1 }
  0x93   : > { %v1376_v48 = vpop.permute.xlu1 %1134  ;;  %v1378_v49 = vpop.permute.xlu0 %1124 }
  0x94   : > { %v1137_v29 = vunpack.i.h.bf16 %v1376_v48  ;;  %v1136_v30 = vunpack.i.l.bf16 %v1376_v48  ;;  %v1127_v36 = vunpack.i.h.bf16 %v1378_v49  ;;  %v1126_v37 = vunpack.i.l.bf16 %v1378_v49 }
  0x95   : > { %v377_v48 = vperm.slane %v1407_v20, 4 }
  0x9b   : > { %v1140_v31 = vpop.permute.xlu1 %1139  ;;  %v1130_v34 = vpop.permute.xlu0 %1129 }
  0x9c   : > { %v1142_v38 = vunpack.i.h.bf16 %v1140_v31  ;;  %v1141_v39 = vunpack.i.l.bf16 %v1140_v31  ;;  %v1132_v42 = vunpack.i.h.bf16 %v1130_v34  ;;  %v1131_v46 = vunpack.i.l.bf16 %v1130_v34 }
  0x9e   : > { %v252_v49 = vsel %vm251_vm0, %v1136_v30, %v1141_v39  ;;  %v253_v50 = vsel %vm251_vm0, %v1137_v29, %v1142_v38  ;;  %v254_v51 = vsel %vm251_vm0, %v1141_v39, %v1136_v30  ;;  %v255_v52 = vsel %vm251_vm0, %v1142_v38, %v1137_v29 }
  0x9f   : > { %v274_v53 = vmul.f32 %v272_v45, %v252_v49  ;;  %v275_v54 = vmul.f32 %v273_v56, %v254_v51  ;;  %v276_v55 = vmul.f32 %v272_v45, %v253_v50  ;;  %v277_v59 = vmul.f32 %v273_v56, %v255_v52 }
  0xa0   : > { %v300_v60 = vmul.f32 %v298_v57, %v252_v49  ;;  %v1469_v1 = vmul.f32 %v299_v62, %v254_v51  ;;  %v302_v4 = vmul.f32 %v298_v57, %v253_v50  ;;  %v303_v45 = vmul.f32 %v299_v62, %v255_v52 }
  0xa1   : > { %v326_v7 = vmul.f32 %v1143_v40, %v252_v49  ;;  %v327_v9 = vmul.f32 %v1441_v41, %v254_v51  ;;  %v328_v10 = vmul.f32 %v1143_v40, %v253_v50  ;;  %v239_v56 = vsel %vm238_vm1, %v1126_v37, %v1131_v46 }
  0xa2   : > { %v240_v11 = vsel %vm238_vm1, %v1127_v36, %v1132_v42  ;;  %v241_v57 = vsel %vm238_vm1, %v1131_v46, %v1126_v37  ;;  %v242_v15 = vsel %vm238_vm1, %v1132_v42, %v1127_v36  ;;  %v259_v19 = vmul.f32 %v257_v0, %v239_v56 }
  0xa3   : > { %v258_v62 = vmul.f32 %v256_v63, %v241_v57  ;;  %v260_v29 = vmul.f32 %v256_v63, %v242_v15  ;;  %v261_v30 = vmul.f32 %v257_v0, %v240_v11  ;;  %v284_v31 = vmul.f32 %v282_v61, %v241_v57 }
  0xa4   : > { %v285_v34 = vmul.f32 %v283_v8, %v239_v56  ;;  %v286_v35 = vmul.f32 %v282_v61, %v242_v15  ;;  %v287_v36 = vmul.f32 %v283_v8, %v240_v11  ;;  %v269_v38 = vadd.f32 %v1389_v12, %v259_v19 }
  0xa5   : > { %v268_v37 = vadd.f32 %v264_v23, %v258_v62  ;;  %v270_v63 = vadd.f32 %v1392_v13, %v260_v29  ;;  %v271_v39 = vadd.f32 %v1396_v16, %v261_v30  ;;  %v294_v0 = vadd.f32 %v290_v28, %v284_v31 }
  0xa6   : > { %v295_v40 = vadd.f32 %v1399_v17, %v285_v34  ;;  %v296_v42 = vadd.f32 %v1402_v18, %v286_v35  ;;  %v297_v46 = vadd.f32 %v1410_v21, %v287_v36  ;;  %v279_v8 = vadd.f32 %v275_v54, %v269_v38 }
  0xa7   : > { %v278_v61 = vadd.f32 %v274_v53, %v268_v37  ;;  %v280_v23 = vadd.f32 %v276_v55, %v270_v63  ;;  %v281_v49 = vadd.f32 %v277_v59, %v271_v39  ;;  %v310_v12 = vmul.f32 %v308_v14, %v241_v57 }
  0xa8   : > { %v311_v13 = vmul.f32 %v309_v25, %v239_v56  ;;  %v312_v16 = vmul.f32 %v308_v14, %v242_v15  ;;  %v313_v17 = vmul.f32 %v309_v25, %v240_v11  ;;  %v340_v21 = vrot.slane %v279_v8, 7 }
  0xa9   : > { %v339_v18 = vrot.slane %v278_v61, 7  ;;  %v341_v28 = vrot.slane %v280_v23, 7  ;;  %v342_v50 = vrot.slane %v281_v49, 7  ;;  %v320_v51 = vadd.f32 %v1430_v32, %v310_v12 }
  0xaa   : > { %v321_v53 = vadd.f32 %v1421_v26, %v311_v13  ;;  %v322_v54 = vadd.f32 %v1413_v22, %v312_v16  ;;  %v323_v55 = vadd.f32 %v1424_v27, %v313_v17  ;;  %v304_v59 = vadd.f32 %v300_v60, %v294_v0 }
  0xab   : > { %v306_v56 = vadd.f32 %v302_v4, %v296_v42  ;;  %v344_v33 = vsel %vm343_vm2, %v339_v18, %v341_v28  ;;  %v346_v43 = vsel %vm343_vm2, %v341_v28, %v339_v18  ;;  %v329_v14 = vmul.f32 %v1441_v41, %v255_v52 }
  0xac   : > { %v330_v25 = vadd.f32 %v326_v7, %v320_v51  ;;  %v332_v11 = vadd.f32 %v328_v10, %v322_v54  ;;  %v348_v32 = vsel %vm337_vm3, %v346_v43, 0.0  ;;  %v307_v22 = vadd.f32 %v303_v45, %v297_v46 }
  0xad   : > { %v367_v26 = vadd.f32 %v348_v32, %v304_v59  ;;  %v369_v57 = vadd.f32 %v344_v33, %v306_v56  ;;  %v331_v15 = vadd.f32 %v327_v9, %v321_v53  ;;  %v333_v4 = vadd.f32 %v329_v14, %v323_v55 }
  0xae   : > { %v354_v27 = vrot.slane %v330_v25, 1  ;;  %v356_v60 = vrot.slane %v332_v11, 1  ;;  %v345_v62 = vsel %vm343_vm2, %v340_v21, %v342_v50  ;;  %v305_v19 = vadd.f32 %v1469_v1, %v295_v40 }
  0xaf   : > { %v347_v41 = vsel %vm343_vm2, %v342_v50, %v340_v21  ;;  %v355_v52 = vrot.slane %v331_v15, 1  ;;  %v370_v7 = vadd.f32 %v345_v62, %v307_v22  ;;  %v357_v29 = vrot.slane %v333_v4, 1  ;;  %v1567_v4 = vld [vmem:[%s1690_s1 + $0x20] sm:$0xff]  ;;  %v1572_v62 = vld [vmem:[%s1690_s1 + $0x28] sm:$0xff] }
  0xb0   : > { %v359_v10 = vsel %vm358_vm4, %v354_v27, %v356_v60  ;;  %v361_v45 = vsel %vm358_vm4, %v356_v60, %v354_v27  ;;  %v349_v9 = vsel %vm337_vm3, %v347_v41, 0.0  ;;  %v381_v34 = vperm.slane %v377_v48, 0 }
  0xb1   : > { %v365_v30 = vsel %vm353_vm5, %v361_v45, 0.0  ;;  %v371_v31 = vadd.f32 %v367_v26, %v359_v10  ;;  %v368_v1 = vadd.f32 %v349_v9, %v305_v19  ;;  %v360_v36 = vsel %vm358_vm4, %v355_v52, %v357_v29 }
  0xb2   : > { %v373_v35 = vadd.f32 %v369_v57, %v365_v30  ;;  %v362_v37 = vsel %vm358_vm4, %v357_v29, %v355_v52  ;;  %v424_v13 = vperm.slane %v1407_v20, 1  ;;  %v425_v17 = vperm.slane %v1407_v20, 5 }
  0xb3   : > { %v382_v38 = vadd.f32 %v1461_v58, %v371_v31  ;;  %v366_v63 = vsel %vm353_vm5, %v362_v37, 0.0  ;;  %v372_v39 = vadd.f32 %v368_v1, %v360_v36  ;;  %v680_v19 = vperm.slane %v1567_v4, 1 }
  0xb4   : > { %v384_v0 = vadd.f32 %v1461_v58, %v373_v35  ;;  %v374_v40 = vadd.f32 %v370_v7, %v366_v63  ;;  %v428_v16 = vperm.slane %v424_v13, 1  ;;  %v429_v50 = vperm.slane %v425_v17, 1 }
  0xb5   : > { %v386_v42 = vmax.f32 %v382_v38, 0.0  ;;  %v383_v46 = vadd.f32 %v381_v34, %v372_v39  ;;  %v706_v41 = vperm.slane %v1567_v4, 4  ;;  %v681_v52 = vperm.slane %v1572_v62, 1 }
  0xb6   : > { %v388_v61 = vmax.f32 %v384_v0, 0.0  ;;  %v385_v48 = vadd.f32 %v381_v34, %v374_v40  ;;  %v707_v7 = vperm.slane %v1572_v62, 4  ;;  %v732_v10 = vperm.slane %v1567_v4, 7 }
  0xb7   : > { %v387_v8 = vmax.f32 %v383_v46, 0.0  ;;  %v733_v45 = vperm.slane %v1572_v62, 7  ;;  %v674_v0 = vperm.slane %v1567_v4, 0  ;;  %v675_v40 = vperm.slane %v1572_v62, 0 }
  0xb8   : > { %v390_v23 = vpack.c.bf16 %v388_v61, %v386_v42  ;;  %v389_v49 = vmax.f32 %v385_v48, 0.0  ;;  %v784_v42 = vperm.slane %v1407_v20, 2  ;;  %v785_v46 = vperm.slane %v1407_v20, 6 }
  0xb9   : > { %v700_v61 = vperm.slane %v1567_v4, 3  ;;  %v701_v48 = vperm.slane %v1572_v62, 3  ;;  %v690_v17 = vperm.slane %v1567_v4, 2  ;;  %v691_v20 = vperm.slane %v1572_v62, 2 }
  0xba   : > { %598 = vmatmul.bf16.vlgmr.msra.gmra.mxu0 %v390_v23  ;;  %v391_v12 = vpack.c.bf16 %v389_v49, %v387_v8  ;;  %626 = vmatmul.bf16.vlgmr.msra.gmra.mxu2 %v390_v23  ;;  %v726_v49 = vperm.slane %v1567_v4, 6 }
  0xbc   : > { %612 = vmatmul.bf16.vlgmr.msra.gmra.mxu1 %v391_v12  ;;  %640 = vmatmul.bf16.vlgmr.msra.gmra.mxu3 %v391_v12  ;;  %v727_v12 = vperm.slane %v1572_v62, 6 }
 0x137   : > { %v599_v18 = vpop.f32.mrf.mxu0 }
 0x138   : > { %v600_v58 = vadd.f32 %v599_v18, %v428_v16  ;;  %v716_v18 = vperm.slane %v1567_v4, 5 }
 0x139   : > { %v613_v21 = vpop.f32.mrf.mxu1 }
 0x13a   : > { %v614_v28 = vadd.f32 %v613_v21, %v600_v58  ;;  %v717_v58 = vperm.slane %v1572_v62, 5  ;;  %v1145_v62 = vld [vmem:[%s1690_s1 + $0x30] ss:$0 sm:$0xff] }
 0x13c   : > { %v646_v51 = vmax.f32 %v614_v28, 0.0 }
 0x13d   : > { %v627_v53 = vpop.f32.mrf.mxu2 }
 0x13e   : > { %v628_v54 = vadd.f32 %v627_v53, %v429_v50  ;;  %650 = vrot.lane.b32.xlu2 %v646_v51, %s1249_s14  ;;  %v682_v30 = vmul.f32 %v680_v19, %v646_v51  ;;  %v708_v31 = vmul.f32 %v706_v41, %v646_v51  ;;  %v734_v35 = vmul.f32 %v732_v10, %v646_v51 }
 0x13f   : > { %v641_v55 = vpop.f32.mrf.mxu3  ;;  %v601_v59 = vpop.f32.mrf.mxu0  ;;  %v1598_v53 = vperm.slane %v785_v46, 2 }
 0x140   : > { %v642_v56 = vadd.f32 %v641_v55, %v628_v54  ;;  %v602_v43 = vadd.f32 %v601_v59, %v428_v16 }
 0x141   : > { %v615_v14 = vpop.f32.mrf.mxu1 }
 0x142   : > { %v647_v33 = vmax.f32 %v642_v56, 0.0  ;;  %v616_v11 = vadd.f32 %v615_v14, %v602_v43 }
 0x144   : > { %654 = vrot.lane.b32.xlu0 %v647_v33, %s1249_s14  ;;  %v648_v22 = vmax.f32 %v616_v11, 0.0  ;;  %v683_v1 = vmul.f32 %v681_v52, %v647_v33  ;;  %v709_v34 = vmul.f32 %v707_v7, %v647_v33  ;;  %v735_v36 = vmul.f32 %v733_v45, %v647_v33 }
 0x145   : > { %v629_v25 = vpop.f32.mrf.mxu2 }
 0x146   : > { %v630_v32 = vadd.f32 %v629_v25, %v429_v50  ;;  %662 = vrot.lane.b32.xlu2 %v646_v51, %s1248_s13  ;;  %v684_v37 = vmul.f32 %v680_v19, %v648_v22  ;;  %v710_v63 = vmul.f32 %v706_v41, %v648_v22  ;;  %v736_v39 = vmul.f32 %v732_v10, %v648_v22  ;;  %v1146_v19 = vld [vmem:[%s1690_s1 + $0x38] ss:$0 sm:$0xff] }
 0x147   : > { %v643_v26 = vpop.f32.mrf.mxu3  ;;  %v1596_v51 = vperm.slane %v784_v42, 2 }
 0x148   : > { %v644_v57 = vadd.f32 %v643_v26, %v630_v32 }
 0x14a   : > { %v649_v15 = vmax.f32 %v644_v57, 0.0 }
 0x14c   : > { %656 = vrot.lane.b32.xlu1 %v649_v15, %s1249_s14  ;;  %664 = vrot.lane.b32.xlu0 %v648_v22, %s1248_s13  ;;  %v685_v38 = vmul.f32 %v681_v52, %v649_v15  ;;  %v711_v13 = vmul.f32 %v707_v7, %v649_v15  ;;  %v737_v16 = vmul.f32 %v733_v45, %v649_v15 }
 0x14e   : > { %652 = vrot.lane.b32.xlu2 %v648_v22, %s1249_s14 }
 0x154   : > { %666 = vrot.lane.b32.xlu1 %v647_v33, %s1248_s13 }
 0x156   : > { %668 = vrot.lane.b32.xlu2 %v649_v15, %s1248_s13  ;;  %s1197_s13 = scalar_lea.hbm %s1693_s4, 64 }
 0x157   : > { %p1199_p4 = scmp.lt.s32.totalorder %s1197_s13, %s1193_s10 }
 0x159   : > { %p1200_p7 = por %p1199_p4, %p1198_p3 }
 0x15b   : > { %p1201_p8 = pnand %p1200_p7, %p1196_p2 }
 0x198   : > { %v651_v27 = vpop.permute.xlu2 %650 }
 0x1a0   : > { %v1562_v60 = vpop.permute.xlu2 %662 }
 0x1a8   : > { %v653_v29 = vpop.permute.xlu2 %652 }
 0x1b0   : > { %v669_v32 = vpop.permute.xlu2 %668 }
 0x1b6   : > { %v655_v9 = vpop.permute.xlu0 %654 }
 0x1b7   : > { %v658_v8 = vsel %vm238_vm1, %v651_v27, %v655_v9  ;;  %v660_v23 = vsel %vm238_vm1, %v655_v9, %v651_v27 }
 0x1b8   : > { %v676_v21 = vmul.f32 %v674_v0, %v660_v23  ;;  %v677_v28 = vmul.f32 %v675_v40, %v658_v8  ;;  %v702_v54 = vmul.f32 %v700_v61, %v660_v23  ;;  %v703_v55 = vmul.f32 %v701_v48, %v658_v8 }
 0x1b9   : > { %v728_v43 = vmul.f32 %v726_v49, %v660_v23  ;;  %v729_v14 = vmul.f32 %v727_v12, %v658_v8 }
 0x1ba   : > { %v686_v27 = vadd.f32 %v682_v30, %v676_v21  ;;  %v687_v4 = vadd.f32 %v683_v1, %v677_v28  ;;  %v712_v7 = vadd.f32 %v708_v31, %v702_v54  ;;  %v713_v10 = vadd.f32 %v709_v34, %v703_v55 }
 0x1bb   : > { %v739_v30 = vadd.f32 %v735_v36, %v729_v14 }
 0x1be   : > { %v657_v50 = vpop.permute.xlu1 %656  ;;  %v665_v33 = vpop.permute.xlu0 %664 }
 0x1bf   : > { %v659_v59 = vsel %vm238_vm1, %v653_v29, %v657_v50  ;;  %v661_v56 = vsel %vm238_vm1, %v657_v50, %v653_v29  ;;  %v671_v41 = vsel %vm251_vm0, %v665_v33, %v669_v32  ;;  %v673_v52 = vsel %vm251_vm0, %v669_v32, %v665_v33 }
 0x1c0   : > { %v678_v25 = vmul.f32 %v674_v0, %v661_v56  ;;  %v679_v11 = vmul.f32 %v675_v40, %v659_v59  ;;  %v704_v26 = vmul.f32 %v700_v61, %v661_v56  ;;  %v705_v57 = vmul.f32 %v701_v48, %v659_v59 }
 0x1c1   : > { %v730_v22 = vmul.f32 %v726_v49, %v661_v56  ;;  %v731_v15 = vmul.f32 %v727_v12, %v659_v59  ;;  %v738_v29 = vadd.f32 %v734_v35, %v728_v43  ;;  %v694_v46 = vmul.f32 %v690_v17, %v671_v41 }
 0x1c2   : > { %v688_v45 = vadd.f32 %v684_v37, %v678_v25  ;;  %v689_v9 = vadd.f32 %v685_v38, %v679_v11  ;;  %v714_v40 = vadd.f32 %v710_v63, %v704_v26  ;;  %v715_v42 = vadd.f32 %v711_v13, %v705_v57 }
 0x1c3   : > { %v740_v1 = vadd.f32 %v736_v39, %v730_v22  ;;  %v741_v0 = vadd.f32 %v737_v16, %v731_v15  ;;  %v695_v61 = vmul.f32 %v691_v20, %v673_v52  ;;  %v720_v48 = vmul.f32 %v716_v18, %v671_v41 }
 0x1c4   : > { %v721_v8 = vmul.f32 %v717_v58, %v673_v52  ;;  %v746_v23 = vmul.f32 %v1145_v62, %v671_v41  ;;  %v747_v49 = vmul.f32 %v1146_v19, %v673_v52  ;;  %v698_v21 = vadd.f32 %v694_v46, %v688_v45 }
 0x1c5   : > { %v699_v28 = vadd.f32 %v695_v61, %v689_v9  ;;  %v724_v50 = vadd.f32 %v720_v48, %v714_v40 }
 0x1c6   : > { %v667_v12 = vpop.permute.xlu1 %666  ;;  %v750_v35 = vadd.f32 %v746_v23, %v740_v1  ;;  %v751_v36 = vadd.f32 %v747_v49, %v741_v0  ;;  %v725_v54 = vadd.f32 %v721_v8, %v715_v42  ;;  %v754_v56 = vrot.slane %v698_v21, 7 }
 0x1c7   : > { %v670_v31 = vsel %vm251_vm0, %v1562_v60, %v667_v12  ;;  %v672_v34 = vsel %vm251_vm0, %v667_v12, %v1562_v60  ;;  %v755_v33 = vrot.slane %v699_v28, 7 }
 0x1c8   : > { %v692_v37 = vmul.f32 %v690_v17, %v670_v31  ;;  %v693_v38 = vmul.f32 %v691_v20, %v672_v34  ;;  %v718_v63 = vmul.f32 %v716_v18, %v670_v31  ;;  %v719_v39 = vmul.f32 %v717_v58, %v672_v34 }
 0x1c9   : > { %v744_v13 = vmul.f32 %v1145_v62, %v670_v31  ;;  %v745_v16 = vmul.f32 %v1146_v19, %v672_v34  ;;  %v766_v44 = vrot.slane %v750_v35, 1  ;;  %v767_v60 = vrot.slane %v751_v36, 1 }
 0x1ca   : > { %v696_v55 = vadd.f32 %v692_v37, %v686_v27  ;;  %v697_v59 = vadd.f32 %v693_v38, %v687_v4  ;;  %v722_v11 = vadd.f32 %v718_v63, %v712_v7  ;;  %v723_v20 = vadd.f32 %v719_v39, %v713_v10 }
 0x1cb   : > { %v748_v43 = vadd.f32 %v744_v13, %v738_v29  ;;  %v749_v14 = vadd.f32 %v745_v16, %v739_v30 }
 0x1cc   : > { %v752_v25 = vrot.slane %v696_v55, 7  ;;  %v753_v17 = vrot.slane %v697_v59, 7 }
 0x1cd   : > { %v764_v18 = vrot.slane %v748_v43, 1  ;;  %v765_v58 = vrot.slane %v749_v14, 1 }
 0x1ce   : > { %v756_v32 = vsel %vm343_vm2, %v752_v25, %v754_v56  ;;  %v757_v26 = vsel %vm343_vm2, %v753_v17, %v755_v33  ;;  %v758_v57 = vsel %vm343_vm2, %v754_v56, %v752_v25  ;;  %v759_v22 = vsel %vm343_vm2, %v755_v33, %v753_v17 }
 0x1cf   : > { %v760_v15 = vsel %vm337_vm3, %v758_v57, 0.0  ;;  %v761_v27 = vsel %vm337_vm3, %v759_v22, 0.0  ;;  %v768_v4 = vsel %vm358_vm4, %v764_v18, %v766_v44  ;;  %v769_v62 = vsel %vm358_vm4, %v765_v58, %v767_v60 }
 0x1d0   : > { %v770_v19 = vsel %vm358_vm4, %v766_v44, %v764_v18  ;;  %v771_v41 = vsel %vm358_vm4, %v767_v60, %v765_v58  ;;  %v776_v52 = vadd.f32 %v760_v15, %v722_v11  ;;  %v777_v7 = vadd.f32 %v761_v27, %v723_v20 }
 0x1d1   : > { %v774_v10 = vsel %vm353_vm5, %v770_v19, 0.0  ;;  %v775_v45 = vsel %vm353_vm5, %v771_v41, 0.0  ;;  %v778_v9 = vadd.f32 %v756_v32, %v724_v50  ;;  %v779_v29 = vadd.f32 %v757_v26, %v725_v54 }
 0x1d2   : > { %v780_v30 = vadd.f32 %v776_v52, %v768_v4  ;;  %v781_v1 = vadd.f32 %v777_v7, %v769_v62 }
 0x1d3   : > { %v782_v0 = vadd.f32 %v778_v9, %v774_v10  ;;  %v783_v40 = vadd.f32 %v779_v29, %v775_v45 }
 0x1d4   : > { %v790_v24 = vadd.f32 %v1596_v51, %v780_v30  ;;  %v791_v42 = vadd.f32 %v1598_v53, %v781_v1 }
 0x1d5   : > { %v792_v46 = vadd.f32 %v1596_v51, %v782_v0  ;;  %v793_v47 = vadd.f32 %v1598_v53, %v783_v40 }
 0x1d6   : > { %v794_v61 = vadd.f32 %v790_v24, %v1339_v2  ;;  %v795_v48 = vadd.f32 %v791_v42, %v1345_v5 }
 0x1d7   : > { %v796_v8 = vadd.f32 %v792_v46, %v1341_v3  ;;  %v797_v23 = vadd.f32 %v793_v47, %v1347_v6 }
 0x1d8   : > { %798 = vst [vmem:[%s207_s19] sm:$0xff] %v794_v61 }
 0x1d9   : > { %799 = vst [vmem:[%s207_s19 + $0x8] sm:$0xff] %v795_v48 }
 0x1da   : > { %800 = vst [vmem:[%s207_s19 + $0x10] sm:$0xff] %v796_v8 }
 0x1db   : > { %801 = vst [vmem:[%s207_s19 + $0x18] sm:$0xff] %v797_v23 }
 0x1dc   : > { %1204 = shalt.err (!%p1201_p8)
}
 0x1dd   : > { %s1250_s23 = smov 256  }
 0x1de   : > { %1072 = dma.vmem_to_hbm [thread:$0]  (%p1314_p5), %s816_s6, 512, %s818_s7, %s803_s8, %s1250_s23, %s1250_s23, %s1249_s14  }
 0x1df PF: > { %p1084_p9 = scmp.ge.s32.totalorder %s1243_s18, 2  ;;  %s832_s27 = sand.u32 1, %s1231_s15  }
 0x1e0   : > { %s833_s28 = scalar_lea.sflag [#allocation4], %s832_s27 }
 0x1e1   : > { %p1079_p10 = pnand %p1084_p9, %p1318_p6 }
 0x1e3   : > { %p1080_p11 = pneg %p1079_p10 }
 0x1e5   : > { %1226 = dma.done.wait (%p1080_p11), %s833_s28, 512  }
 0x1e6   : > { %1228 = vsyncadd (%p1080_p11), %s833_s28, 4294966784  ;;  %p15_p12 = scmp.ge.s32.totalorder %s1301_s21, 4   ;;  %s1696_s15 = smov %s1235_s16 }
 0x1e7   : > { %s1697_s16 = smov %s1239_s17  ;;  %s1698_s17 = smov %s1312_s24 }
 0x1e8   : > { %s1699_s18 = smov %s1301_s21  ;;  %17 = sbr.rel (!%p15_p12) target bundleno = 4 (0x4), region = 76 }
 0x1ed   :  { %839 = vsyncpa [#allocation3], 1 }
 0x1ee   :  { %841 = vsyncpa [#allocation3 + $0x1], 1 }
 0x1ef   :  { %842 = vsyncpa [#allocation4], 1 }
 0x1f0   :  { %844 = vsyncpa [#allocation4 + $0x1], 1 }

</bundles_post_ra>
